<compile_context>
chip_gen: v7x
topology: tpu7x:2x2x1
jax: 0.10.0
libtpu: 0.0.40
codegen_flags: <defaults>
</compile_context>

<pallas_src>
import jax
import jax.numpy as jnp
from jax.experimental import pallas as pl
from jax.experimental.pallas import tpu as pltpu

_NEG_INF = -1e9
_EXIT_W = 128  # lane-dense exit-layer output width


def _round_up(n, m):
    return ((n + m - 1) // m) * m


def _make_kernel(emit_exit):
    def kernel(inv_thr_ref, x_ref,
               w1_ref, b1_ref, w2_ref, b2_ref, w3_ref, b3_ref,
               e1w_ref, e1b_ref, e2w_ref, e2b_ref, e3w_ref, e3b_ref,
               *out_refs):
        logits_ref = out_refs[0]
        exit_ref = out_refs[1] if emit_exit else None

        inv_thr = inv_thr_ref[0]          # scalar f32 (= 1 / confidence_threshold)
        x = x_ref[...]                    # bf16 [TB, Fp]

        def dense(h_bf16, w_ref, b_ref):
            # bf16 operands, f32 accumulation on the MXU; bias add in f32.
            return (jnp.dot(h_bf16, w_ref[...], preferred_element_type=jnp.float32)
                    + b_ref[...])

        def softmax_denom(logits_f32):
            # max softmax prob == 1 / denom; compare denom <= 1/thr (no per-row divide)
            m = jnp.max(logits_f32, axis=-1, keepdims=True)
            return jnp.sum(jnp.exp(logits_f32 - m), axis=-1, keepdims=True)

        def any_pending(done):
            # scalar: True if at least one row of the tile has not exited yet
            return jnp.sum(jnp.logical_not(done).astype(jnp.float32)) > 0.0

        # ---- layer 1 + exit head 1 ----------------------------------------
        h1b = jnp.maximum(dense(x, w1_ref, b1_ref), 0.0).astype(jnp.bfloat16)
        l1 = dense(h1b, e1w_ref, e1b_ref)            # f32 [TB, Cp]
        take1 = softmax_denom(l1) <= inv_thr         # [TB, 1] bool
        logits_ref[...] = l1
        if emit_exit:
            exit_ref[...] = jnp.zeros_like(exit_ref)

        # ---- layers 2/3 only run if some row in the tile did not exit -------
        @pl.when(any_pending(take1))
        def _():
            h2b = jnp.maximum(dense(h1b, w2_ref, b2_ref), 0.0).astype(jnp.bfloat16)
            l2 = dense(h2b, e2w_ref, e2b_ref)
            take2 = jnp.logical_and(jnp.logical_not(take1),
                                    softmax_denom(l2) <= inv_thr)
            logits_ref[...] = jnp.where(take2, l2, logits_ref[...])
            if emit_exit:
                exit_ref[...] = jnp.where(take2, 1, exit_ref[...])
            done = jnp.logical_or(take1, take2)

            @pl.when(any_pending(done))
            def _():
                h3b = jnp.maximum(dense(h2b, w3_ref, b3_ref), 0.0).astype(jnp.bfloat16)
                l3 = dense(h3b, e3w_ref, e3b_ref)
                logits_ref[...] = jnp.where(done, logits_ref[...], l3)
                if emit_exit:
                    exit_ref[...] = jnp.where(done, exit_ref[...], 2)

    return kernel


def _vmem_limit_bytes(TB, Fp, Hp, Cp, emit_exit):
    bf, f32, i32 = 2, 4, 4
    weights = (Fp * Hp + 2 * Hp * Hp + 3 * Hp * Cp) * bf    # VMEM-resident, 1 buffer
    biases = (3 * Hp + 3 * Cp) * f32
    x_io = 2 * TB * Fp * bf                                  # double-buffered x tile
    out_io = 2 * TB * Cp * f32
    if emit_exit:
        out_io += 2 * TB * _EXIT_W * i32
    scratch = TB * Hp * (f32 + 2 * bf) + 2 * TB * Cp * f32   # rough live intermediates
    budget = int(1.25 * (weights + biases + x_io + out_io + scratch)) + (2 << 20)
    try:
        cap = int(0.9 * pltpu.get_tpu_info().vmem_capacity_bytes)
    except Exception:
        cap = 64 << 20
    return int(min(max(budget, 32 << 20), cap))


def dynamic_depth_forward(x, params, *, confidence_threshold=0.8,
                          return_exit_layer=False, batch_tile=256):
    B, F = x.shape
    H = params["w1"].shape[1]
    C = params["e1w"].shape[1]

    Fp = _round_up(F, 128)      # clean MXU K passes / aligned x loads
    Hp = _round_up(H, 128)
    Cp = _round_up(C, 128)

    # bf16 native sublane tile is 16 -> TB is a multiple of 16; split the batch into
    # >= 2 tiles when possible so v7x's two TensorCores both get work.
    batch_tile = max(16, (batch_tile // 16) * 16)
    TB = min(_round_up(B, 16), batch_tile)
    if _round_up(B, 16) > 16:
        TB = min(TB, _round_up(-(-B // 2), 16))
    Bp = _round_up(B, TB)
    nb = Bp // TB

    def pad2(a, rows, cols, fill=0.0):
        r, c = a.shape
        return jnp.pad(a, ((0, rows - r), (0, cols - c)), constant_values=fill)

    bf16 = jnp.bfloat16
    # zero-padded input/hidden units: bias 0 -> ReLU(0) = 0 -> contribute nothing
    w1p = pad2(params["w1"], Fp, Hp).astype(bf16)
    b1p = pad2(params["b1"], 1, Hp).astype(jnp.float32)
    w2p = pad2(params["w2"], Hp, Hp).astype(bf16)
    b2p = pad2(params["b2"], 1, Hp).astype(jnp.float32)
    w3p = pad2(params["w3"], Hp, Hp).astype(bf16)
    b3p = pad2(params["b3"], 1, Hp).astype(jnp.float32)
    # padded class columns get a -1e9 bias so exp() == 0 and confidence is unchanged
    e1wp = pad2(params["e1w"], Hp, Cp).astype(bf16)
    e1bp = pad2(params["e1b"], 1, Cp, fill=_NEG_INF).astype(jnp.float32)
    e2wp = pad2(params["e2w"], Hp, Cp).astype(bf16)
    e2bp = pad2(params["e2b"], 1, Cp, fill=_NEG_INF).astype(jnp.float32)
    e3wp = pad2(params["e3w"], Hp, Cp).astype(bf16)
    e3bp = pad2(params["e3b"], 1, Cp, fill=_NEG_INF).astype(jnp.float32)

    x_p = jnp.pad(x, ((0, Bp - B), (0, Fp - F))).astype(bf16)
    # SMEM scalar: 1/threshold (softmax denom <= 1/thr  <=>  max-prob >= thr)
    inv_thr = jnp.full((1,), 1.0 / max(float(confidence_threshold), 1e-30), jnp.float32)

    # Constant weights/biases: whole array resident in VMEM, single buffer.
    vmem_const = pl.BlockSpec(memory_space=pltpu.MemorySpace.VMEM)
    in_specs = [
        pl.BlockSpec(memory_space=pltpu.MemorySpace.SMEM),   # 1/threshold scalar
        pl.BlockSpec((TB, Fp), lambda i: (i, 0)),            # x tile (pipelined)
        vmem_const, vmem_const,   # w1, b1
        vmem_const, vmem_const,   # w2, b2
        vmem_const, vmem_const,   # w3, b3
        vmem_const, vmem_const,   # e1w, e1b
        vmem_const, vmem_const,   # e2w, e2b
        vmem_const, vmem_const,   # e3w, e3b
    ]

    if return_exit_layer:
        out_specs = (pl.BlockSpec((TB, Cp), lambda i: (i, 0)),
                     pl.BlockSpec((TB, _EXIT_W), lambda i: (i, 0)))
        out_shape = (jax.ShapeDtypeStruct((Bp, Cp), jnp.float32),
                     jax.ShapeDtypeStruct((Bp, _EXIT_W), jnp.int32))
    else:
        out_specs = pl.BlockSpec((TB, Cp), lambda i: (i, 0))
        out_shape = jax.ShapeDtypeStruct((Bp, Cp), jnp.float32)

    out = pl.pallas_call(
        _make_kernel(return_exit_layer),
        grid=(nb,),
        in_specs=in_specs,
        out_specs=out_specs,
        out_shape=out_shape,
        compiler_params=pltpu.CompilerParams(
            dimension_semantics=("parallel",),
            vmem_limit_bytes=_vmem_limit_bytes(TB, Fp, Hp, Cp, return_exit_layer)),
    )(inv_thr, x_p,
      w1p, b1p, w2p, b2p, w3p, b3p,
      e1wp, e1bp, e2wp, e2bp, e3wp, e3bp)

    if return_exit_layer:
        logits_p, exit_p = out
        return logits_p[:B, :C], exit_p[:B, 0]
    return out[:B, :C]


def init_params(key, input_size, hidden_size, num_classes):
    """Deterministic PyTorch-Linear-style init (U[-1/sqrt(fan_in), 1/sqrt(fan_in)])."""
    keys = jax.random.split(key, 12)

    def lin(kw, kb, fan_in, fan_out):
        bound = 1.0 / jnp.sqrt(jnp.float32(fan_in))
        w = jax.random.uniform(kw, (fan_in, fan_out), jnp.float32, -bound, bound)
        b = jax.random.uniform(kb, (1, fan_out), jnp.float32, -bound, bound)
        return w, b

    p = {}
    p["w1"], p["b1"] = lin(keys[0], keys[1], input_size, hidden_size)
    p["w2"], p["b2"] = lin(keys[2], keys[3], hidden_size, hidden_size)
    p["w3"], p["b3"] = lin(keys[4], keys[5], hidden_size, hidden_size)
    p["e1w"], p["e1b"] = lin(keys[6], keys[7], hidden_size, num_classes)
    p["e2w"], p["e2b"] = lin(keys[8], keys[9], hidden_size, num_classes)
    p["e3w"], p["e3b"] = lin(keys[10], keys[11], hidden_size, num_classes)
    return p


def _reference_forward(x, p, confidence_threshold=0.8):
    """Plain-JAX reference with the same bf16-matmul / f32-accumulate numerics."""
    bf16 = jnp.bfloat16
    inv_thr = 1.0 / max(float(confidence_threshold), 1e-30)

    def dense(h, w, b):
        return jnp.dot(h.astype(bf16), w.astype(bf16),
                       preferred_element_type=jnp.float32) + b

    def denom(l):
        m = jnp.max(l, axis=-1, keepdims=True)
        return jnp.sum(jnp.exp(l - m), axis=-1, keepdims=True)

    h1 = jnp.maximum(dense(x, p["w1"], p["b1"]), 0.0)
    l1 = dense(h1, p["e1w"], p["e1b"])
    h2 = jnp.maximum(dense(h1, p["w2"], p["b2"]), 0.0)
    l2 = dense(h2, p["e2w"], p["e2b"])
    h3 = jnp.maximum(dense(h2, p["w3"], p["b3"]), 0.0)
    l3 = dense(h3, p["e3w"], p["e3b"])
    t1 = denom(l1) <= inv_thr
    t2 = jnp.logical_and(~t1, denom(l2) <= inv_thr)
    logits = jnp.where(t1, l1, jnp.where(t2, l2, l3))
    exit_layer = jnp.where(t1, 0, jnp.where(t2, 1, 2)).astype(jnp.int32)[:, 0]
    return logits, exit_layer


if __name__ == "__main__":
    batch, input_size, hidden_size, num_classes = 8, 16, 32, 10
    key = jax.random.PRNGKey(0)
    k_x, k_p = jax.random.split(key)

    x = jax.random.normal(k_x, (batch, input_size), jnp.float32)
    params = init_params(k_p, input_size, hidden_size, num_classes)

    # high threshold: typically no early exit -> full-depth path exercised
    logits, exits = dynamic_depth_forward(
        x, params, confidence_threshold=0.8, return_exit_layer=True)
    logits = jax.block_until_ready(logits)
    exits = jax.block_until_ready(exits)
    ref_logits, ref_exits = _reference_forward(x, params, 0.8)
    assert logits.shape == (batch, num_classes)
    assert jnp.allclose(logits, ref_logits, atol=1e-2, rtol=1e-2)
    assert jnp.array_equal(exits, ref_exits)

    # logits-only variant (no exit-layer HBM output)
    logits_only = jax.block_until_ready(
        dynamic_depth_forward(x, params, confidence_threshold=0.8))
    assert jnp.allclose(logits_only, logits)

    # low threshold: everyone exits early -> tile-level layer-2/3 skip exercised
    logits_lo, exits_lo = dynamic_depth_forward(
        x, params, confidence_threshold=0.05, return_exit_layer=True)
    logits_lo = jax.block_until_ready(logits_lo)
    ref_logits_lo, ref_exits_lo = _reference_forward(x, params, 0.05)
    assert jnp.allclose(logits_lo, ref_logits_lo, atol=1e-2, rtol=1e-2)
    assert jnp.array_equal(exits_lo, ref_exits_lo)

    print("KERNEL_OK")
</pallas_src>

<mosaic_0001>
module attributes {stable_mosaic.version = 11 : i64} {
  func.func @kernel(%arg0: i32, %arg1: memref<1xf32, #tpu.memory_space<smem>>, %arg2: memref<16x128xbf16, #tpu.memory_space<vmem>>, %arg3: memref<128x128xbf16, #tpu.memory_space<vmem>>, %arg4: memref<1x128xf32, #tpu.memory_space<vmem>>, %arg5: memref<128x128xbf16, #tpu.memory_space<vmem>>, %arg6: memref<1x128xf32, #tpu.memory_space<vmem>>, %arg7: memref<128x128xbf16, #tpu.memory_space<vmem>>, %arg8: memref<1x128xf32, #tpu.memory_space<vmem>>, %arg9: memref<128x128xbf16, #tpu.memory_space<vmem>>, %arg10: memref<1x128xf32, #tpu.memory_space<vmem>>, %arg11: memref<128x128xbf16, #tpu.memory_space<vmem>>, %arg12: memref<1x128xf32, #tpu.memory_space<vmem>>, %arg13: memref<128x128xbf16, #tpu.memory_space<vmem>>, %arg14: memref<1x128xf32, #tpu.memory_space<vmem>>, %arg15: memref<16x128xf32, #tpu.memory_space<vmem>>, %arg16: memref<16x128xi32, #tpu.memory_space<vmem>>) attributes {dimension_semantics = [#tpu.dimension_semantics<parallel>], iteration_bounds = array<i64: 1>, scalar_prefetch = 0 : i64, scratch_operands = 0 : i64, tpu.core_type = #tpu.core_type<tc>, window_params = [{transform_indices = @transform_0, window_bounds = array<i64: 1>}, {transform_indices = @transform_1, window_bounds = array<i64: 16, 128>}, {pipeline_mode = #tpu.pipeline_mode<synchronous>, transform_indices = @transform_2, window_bounds = array<i64: 128, 128>}, {pipeline_mode = #tpu.pipeline_mode<synchronous>, transform_indices = @transform_3, window_bounds = array<i64: 1, 128>}, {pipeline_mode = #tpu.pipeline_mode<synchronous>, transform_indices = @transform_4, window_bounds = array<i64: 128, 128>}, {pipeline_mode = #tpu.pipeline_mode<synchronous>, transform_indices = @transform_5, window_bounds = array<i64: 1, 128>}, {pipeline_mode = #tpu.pipeline_mode<synchronous>, transform_indices = @transform_6, window_bounds = array<i64: 128, 128>}, {pipeline_mode = #tpu.pipeline_mode<synchronous>, transform_indices = @transform_7, window_bounds = array<i64: 1, 128>}, {pipeline_mode = #tpu.pipeline_mode<synchronous>, transform_indices = @transform_8, window_bounds = array<i64: 128, 128>}, {pipeline_mode = #tpu.pipeline_mode<synchronous>, transform_indices = @transform_9, window_bounds = array<i64: 1, 128>}, {pipeline_mode = #tpu.pipeline_mode<synchronous>, transform_indices = @transform_10, window_bounds = array<i64: 128, 128>}, {pipeline_mode = #tpu.pipeline_mode<synchronous>, transform_indices = @transform_11, window_bounds = array<i64: 1, 128>}, {pipeline_mode = #tpu.pipeline_mode<synchronous>, transform_indices = @transform_12, window_bounds = array<i64: 128, 128>}, {pipeline_mode = #tpu.pipeline_mode<synchronous>, transform_indices = @transform_13, window_bounds = array<i64: 1, 128>}, {transform_indices = @transform_14, window_bounds = array<i64: 16, 128>}, {transform_indices = @transform_15, window_bounds = array<i64: 16, 128>}]} {
    %c0 = arith.constant 0 : index
    %0 = memref.load %arg1[%c0] : memref<1xf32, #tpu.memory_space<smem>>
    %c0_0 = arith.constant 0 : index
    %c0_1 = arith.constant 0 : index
    %1 = vector.load %arg2[%c0_0, %c0_1] : memref<16x128xbf16, #tpu.memory_space<vmem>>, vector<16x128xbf16>
    %c0_2 = arith.constant 0 : index
    %c0_3 = arith.constant 0 : index
    %2 = vector.load %arg3[%c0_2, %c0_3] : memref<128x128xbf16, #tpu.memory_space<vmem>>, vector<128x128xbf16>
    %cst = arith.constant dense<0.000000e+00> : vector<16x128xf32>
    %3 = tpu.matmul %1, %2, %cst {dimension_numbers = #tpu.dot_dimension_numbers<[1], [0], [0], [1], [0, 0, 1, 1], [], []>} : vector<16x128xbf16>, vector<128x128xbf16>, vector<16x128xf32> -> vector<16x128xf32>
    %c0_4 = arith.constant 0 : index
    %c0_5 = arith.constant 0 : index
    %4 = vector.load %arg4[%c0_4, %c0_5] : memref<1x128xf32, #tpu.memory_space<vmem>>, vector<1x128xf32>
    %5 = vector.broadcast %4 : vector<1x128xf32> to vector<16x128xf32>
    %6 = arith.addf %3, %5 : vector<16x128xf32>
    %cst_6 = arith.constant 0.000000e+00 : f32
    %7 = vector.broadcast %cst_6 : f32 to vector<16x128xf32>
    %8 = arith.maximumf %6, %7 : vector<16x128xf32>
    %9 = arith.truncf %8 : vector<16x128xf32> to vector<16x128xbf16>
    %c0_7 = arith.constant 0 : index
    %c0_8 = arith.constant 0 : index
    %10 = vector.load %arg9[%c0_7, %c0_8] : memref<128x128xbf16, #tpu.memory_space<vmem>>, vector<128x128xbf16>
    %cst_9 = arith.constant dense<0.000000e+00> : vector<16x128xf32>
    %11 = tpu.matmul %9, %10, %cst_9 {dimension_numbers = #tpu.dot_dimension_numbers<[1], [0], [0], [1], [0, 0, 1, 1], [], []>} : vector<16x128xbf16>, vector<128x128xbf16>, vector<16x128xf32> -> vector<16x128xf32>
    %c0_10 = arith.constant 0 : index
    %c0_11 = arith.constant 0 : index
    %12 = vector.load %arg10[%c0_10, %c0_11] : memref<1x128xf32, #tpu.memory_space<vmem>>, vector<1x128xf32>
    %13 = vector.broadcast %12 : vector<1x128xf32> to vector<16x128xf32>
    %14 = arith.addf %11, %13 : vector<16x128xf32>
    %cst_12 = arith.constant dense<0xFF800000> : vector<16xf32>
    %15 = vector.multi_reduction <maximumf>, %14, %cst_12 [1] : vector<16x128xf32> to vector<16xf32>
    %16 = vector.shape_cast %15 : vector<16xf32> to vector<16x1xf32>
    %17 = vector.broadcast %16 : vector<16x1xf32> to vector<16x128xf32>
    %18 = arith.subf %14, %17 : vector<16x128xf32>
    %19 = math.exp %18 : vector<16x128xf32>
    %cst_13 = arith.constant dense<0.000000e+00> : vector<16xf32>
    %20 = vector.multi_reduction <add>, %19, %cst_13 [1] : vector<16x128xf32> to vector<16xf32>
    %21 = vector.shape_cast %20 : vector<16xf32> to vector<16x1xf32>
    %22 = vector.broadcast %0 : f32 to vector<16x1xf32>
    %23 = arith.cmpf ole, %21, %22 : vector<16x1xf32>
    %c0_14 = arith.constant 0 : index
    %c0_15 = arith.constant 0 : index
    %24 = vector.load %arg15[%c0_14, %c0_15] : memref<16x128xf32, #tpu.memory_space<vmem>>, vector<16x128xf32>
    tpu.vector_store %arg15[%c0_14, %c0_15], %14 {strides = array<i32>} : memref<16x128xf32, #tpu.memory_space<vmem>>, vector<16x128xf32>,
    %c0_i32 = arith.constant 0 : i32
    %25 = vector.broadcast %c0_i32 : i32 to vector<16x128xi32>
    %c0_16 = arith.constant 0 : index
    %c0_17 = arith.constant 0 : index
    %26 = vector.load %arg16[%c0_16, %c0_17] : memref<16x128xi32, #tpu.memory_space<vmem>>, vector<16x128xi32>
    tpu.vector_store %arg16[%c0_16, %c0_17], %25 {strides = array<i32>} : memref<16x128xi32, #tpu.memory_space<vmem>>, vector<16x128xi32>,
    %cst_18 = arith.constant dense<true> : vector<16x1xi1>
    %27 = arith.xori %23, %cst_18 : vector<16x1xi1>
    %28 = arith.extui %27 : vector<16x1xi1> to vector<16x1xi32>
    %29 = arith.sitofp %28 : vector<16x1xi32> to vector<16x1xf32>
    %30 = vector.shape_cast %29 : vector<16x1xf32> to vector<1x16x1xf32>
    %cst_19 = arith.constant dense<0.000000e+00> : vector<1xf32>
    %31 = vector.multi_reduction <add>, %30, %cst_19 [1, 2] : vector<1x16x1xf32> to vector<1xf32>
    %32 = vector.shape_cast %31 : vector<1xf32> to vector<1x1x1xf32>
    %33 = vector.extract %32[0, 0, 0] : f32 from vector<1x1x1xf32>
    %cst_20 = arith.constant 0.000000e+00 : f32
    %34 = arith.cmpf ogt, %33, %cst_20 : f32
    %35 = arith.extui %34 : i1 to i32
    %c0_i32_21 = arith.constant 0 : i32
    %36 = arith.cmpi ne, %35, %c0_i32_21 : i32
    scf.if %36 {
      %c0_22 = arith.constant 0 : index
      %c0_23 = arith.constant 0 : index
      %37 = vector.load %arg5[%c0_22, %c0_23] : memref<128x128xbf16, #tpu.memory_space<vmem>>, vector<128x128xbf16>
      %cst_24 = arith.constant dense<0.000000e+00> : vector<16x128xf32>
      %38 = tpu.matmul %9, %37, %cst_24 {dimension_numbers = #tpu.dot_dimension_numbers<[1], [0], [0], [1], [0, 0, 1, 1], [], []>} : vector<16x128xbf16>, vector<128x128xbf16>, vector<16x128xf32> -> vector<16x128xf32>
      %c0_25 = arith.constant 0 : index
      %c0_26 = arith.constant 0 : index
      %39 = vector.load %arg6[%c0_25, %c0_26] : memref<1x128xf32, #tpu.memory_space<vmem>>, vector<1x128xf32>
      %40 = vector.broadcast %39 : vector<1x128xf32> to vector<16x128xf32>
      %41 = arith.addf %38, %40 : vector<16x128xf32>
      %cst_27 = arith.constant 0.000000e+00 : f32
      %42 = vector.broadcast %cst_27 : f32 to vector<16x128xf32>
      %43 = arith.maximumf %41, %42 : vector<16x128xf32>
      %44 = arith.truncf %43 : vector<16x128xf32> to vector<16x128xbf16>
      %c0_28 = arith.constant 0 : index
      %c0_29 = arith.constant 0 : index
      %45 = vector.load %arg11[%c0_28, %c0_29] : memref<128x128xbf16, #tpu.memory_space<vmem>>, vector<128x128xbf16>
      %cst_30 = arith.constant dense<0.000000e+00> : vector<16x128xf32>
      %46 = tpu.matmul %44, %45, %cst_30 {dimension_numbers = #tpu.dot_dimension_numbers<[1], [0], [0], [1], [0, 0, 1, 1], [], []>} : vector<16x128xbf16>, vector<128x128xbf16>, vector<16x128xf32> -> vector<16x128xf32>
      %c0_31 = arith.constant 0 : index
      %c0_32 = arith.constant 0 : index
      %47 = vector.load %arg12[%c0_31, %c0_32] : memref<1x128xf32, #tpu.memory_space<vmem>>, vector<1x128xf32>
      %48 = vector.broadcast %47 : vector<1x128xf32> to vector<16x128xf32>
      %49 = arith.addf %46, %48 : vector<16x128xf32>
      %cst_33 = arith.constant dense<true> : vector<16x1xi1>
      %50 = arith.xori %23, %cst_33 : vector<16x1xi1>
      %cst_34 = arith.constant dense<0xFF800000> : vector<16xf32>
      %51 = vector.multi_reduction <maximumf>, %49, %cst_34 [1] : vector<16x128xf32> to vector<16xf32>
      %52 = vector.shape_cast %51 : vector<16xf32> to vector<16x1xf32>
      %53 = vector.broadcast %52 : vector<16x1xf32> to vector<16x128xf32>
      %54 = arith.subf %49, %53 : vector<16x128xf32>
      %55 = math.exp %54 : vector<16x128xf32>
      %cst_35 = arith.constant dense<0.000000e+00> : vector<16xf32>
      %56 = vector.multi_reduction <add>, %55, %cst_35 [1] : vector<16x128xf32> to vector<16xf32>
      %57 = vector.shape_cast %56 : vector<16xf32> to vector<16x1xf32>
      %58 = vector.broadcast %0 : f32 to vector<16x1xf32>
      %59 = arith.cmpf ole, %57, %58 : vector<16x1xf32>
      %60 = arith.andi %50, %59 : vector<16x1xi1>
      %c0_36 = arith.constant 0 : index
      %c0_37 = arith.constant 0 : index
      %61 = vector.load %arg15[%c0_36, %c0_37] : memref<16x128xf32, #tpu.memory_space<vmem>>, vector<16x128xf32>
      %62 = vector.shape_cast %60 : vector<16x1xi1> to vector<16x1xi1>
      %63 = vector.broadcast %62 : vector<16x1xi1> to vector<16x128xi1>
      %64 = arith.select %63, %49, %61 : vector<16x128xi1>, vector<16x128xf32>
      %c0_38 = arith.constant 0 : index
      %c0_39 = arith.constant 0 : index
      %65 = vector.load %arg15[%c0_38, %c0_39] : memref<16x128xf32, #tpu.memory_space<vmem>>, vector<16x128xf32>
      tpu.vector_store %arg15[%c0_38, %c0_39], %64 {strides = array<i32>} : memref<16x128xf32, #tpu.memory_space<vmem>>, vector<16x128xf32>,
      %c0_40 = arith.constant 0 : index
      %c0_41 = arith.constant 0 : index
      %66 = vector.load %arg16[%c0_40, %c0_41] : memref<16x128xi32, #tpu.memory_space<vmem>>, vector<16x128xi32>
      %c1_i32 = arith.constant 1 : i32
      %67 = vector.shape_cast %60 : vector<16x1xi1> to vector<16x1xi1>
      %68 = vector.broadcast %67 : vector<16x1xi1> to vector<16x128xi1>
      %69 = vector.broadcast %c1_i32 : i32 to vector<16x128xi32>
      %70 = arith.select %68, %69, %66 : vector<16x128xi1>, vector<16x128xi32>
      %c0_42 = arith.constant 0 : index
      %c0_43 = arith.constant 0 : index
      %71 = vector.load %arg16[%c0_42, %c0_43] : memref<16x128xi32, #tpu.memory_space<vmem>>, vector<16x128xi32>
      tpu.vector_store %arg16[%c0_42, %c0_43], %70 {strides = array<i32>} : memref<16x128xi32, #tpu.memory_space<vmem>>, vector<16x128xi32>,
      %72 = arith.ori %23, %60 : vector<16x1xi1>
      %cst_44 = arith.constant dense<true> : vector<16x1xi1>
      %73 = arith.xori %72, %cst_44 : vector<16x1xi1>
      %74 = arith.extui %73 : vector<16x1xi1> to vector<16x1xi32>
      %75 = arith.sitofp %74 : vector<16x1xi32> to vector<16x1xf32>
      %76 = vector.shape_cast %75 : vector<16x1xf32> to vector<1x16x1xf32>
      %cst_45 = arith.constant dense<0.000000e+00> : vector<1xf32>
      %77 = vector.multi_reduction <add>, %76, %cst_45 [1, 2] : vector<1x16x1xf32> to vector<1xf32>
      %78 = vector.shape_cast %77 : vector<1xf32> to vector<1x1x1xf32>
      %79 = vector.extract %78[0, 0, 0] : f32 from vector<1x1x1xf32>
      %cst_46 = arith.constant 0.000000e+00 : f32
      %80 = arith.cmpf ogt, %79, %cst_46 : f32
      %81 = arith.extui %80 : i1 to i32
      %c0_i32_47 = arith.constant 0 : i32
      %82 = arith.cmpi ne, %81, %c0_i32_47 : i32
      scf.if %82 {
        %c0_48 = arith.constant 0 : index
        %c0_49 = arith.constant 0 : index
        %83 = vector.load %arg7[%c0_48, %c0_49] : memref<128x128xbf16, #tpu.memory_space<vmem>>, vector<128x128xbf16>
        %cst_50 = arith.constant dense<0.000000e+00> : vector<16x128xf32>
        %84 = tpu.matmul %44, %83, %cst_50 {dimension_numbers = #tpu.dot_dimension_numbers<[1], [0], [0], [1], [0, 0, 1, 1], [], []>} : vector<16x128xbf16>, vector<128x128xbf16>, vector<16x128xf32> -> vector<16x128xf32>
        %c0_51 = arith.constant 0 : index
        %c0_52 = arith.constant 0 : index
        %85 = vector.load %arg8[%c0_51, %c0_52] : memref<1x128xf32, #tpu.memory_space<vmem>>, vector<1x128xf32>
        %86 = vector.broadcast %85 : vector<1x128xf32> to vector<16x128xf32>
        %87 = arith.addf %84, %86 : vector<16x128xf32>
        %cst_53 = arith.constant 0.000000e+00 : f32
        %88 = vector.broadcast %cst_53 : f32 to vector<16x128xf32>
        %89 = arith.maximumf %87, %88 : vector<16x128xf32>
        %90 = arith.truncf %89 : vector<16x128xf32> to vector<16x128xbf16>
        %c0_54 = arith.constant 0 : index
        %c0_55 = arith.constant 0 : index
        %91 = vector.load %arg13[%c0_54, %c0_55] : memref<128x128xbf16, #tpu.memory_space<vmem>>, vector<128x128xbf16>
        %cst_56 = arith.constant dense<0.000000e+00> : vector<16x128xf32>
        %92 = tpu.matmul %90, %91, %cst_56 {dimension_numbers = #tpu.dot_dimension_numbers<[1], [0], [0], [1], [0, 0, 1, 1], [], []>} : vector<16x128xbf16>, vector<128x128xbf16>, vector<16x128xf32> -> vector<16x128xf32>
        %c0_57 = arith.constant 0 : index
        %c0_58 = arith.constant 0 : index
        %93 = vector.load %arg14[%c0_57, %c0_58] : memref<1x128xf32, #tpu.memory_space<vmem>>, vector<1x128xf32>
        %94 = vector.broadcast %93 : vector<1x128xf32> to vector<16x128xf32>
        %95 = arith.addf %92, %94 : vector<16x128xf32>
        %c0_59 = arith.constant 0 : index
        %c0_60 = arith.constant 0 : index
        %96 = vector.load %arg15[%c0_59, %c0_60] : memref<16x128xf32, #tpu.memory_space<vmem>>, vector<16x128xf32>
        %97 = vector.shape_cast %72 : vector<16x1xi1> to vector<16x1xi1>
        %98 = vector.broadcast %97 : vector<16x1xi1> to vector<16x128xi1>
        %99 = arith.select %98, %96, %95 : vector<16x128xi1>, vector<16x128xf32>
        %c0_61 = arith.constant 0 : index
        %c0_62 = arith.constant 0 : index
        %100 = vector.load %arg15[%c0_61, %c0_62] : memref<16x128xf32, #tpu.memory_space<vmem>>, vector<16x128xf32>
        tpu.vector_store %arg15[%c0_61, %c0_62], %99 {strides = array<i32>} : memref<16x128xf32, #tpu.memory_space<vmem>>, vector<16x128xf32>,
        %c0_63 = arith.constant 0 : index
        %c0_64 = arith.constant 0 : index
        %101 = vector.load %arg16[%c0_63, %c0_64] : memref<16x128xi32, #tpu.memory_space<vmem>>, vector<16x128xi32>
        %c2_i32 = arith.constant 2 : i32
        %102 = vector.shape_cast %72 : vector<16x1xi1> to vector<16x1xi1>
        %103 = vector.broadcast %102 : vector<16x1xi1> to vector<16x128xi1>
        %104 = vector.broadcast %c2_i32 : i32 to vector<16x128xi32>
        %105 = arith.select %103, %101, %104 : vector<16x128xi1>, vector<16x128xi32>
        %c0_65 = arith.constant 0 : index
        %c0_66 = arith.constant 0 : index
        %106 = vector.load %arg16[%c0_65, %c0_66] : memref<16x128xi32, #tpu.memory_space<vmem>>, vector<16x128xi32>
        tpu.vector_store %arg16[%c0_65, %c0_66], %105 {strides = array<i32>} : memref<16x128xi32, #tpu.memory_space<vmem>>, vector<16x128xi32>,
      } else {
      }
    } else {
    }
    return
  }
  func.func @transform_0(%arg0: i32) -> i32 {
    %c0_i32 = arith.constant 0 : i32
    %c0_i32_0 = arith.constant 0 : i32
    return %c0_i32 : i32
  }
  func.func @transform_1(%arg0: i32) -> (i32, i32) {
    %c0_i32 = arith.constant 0 : i32
    %c0_i32_0 = arith.constant 0 : i32
    return %arg0, %c0_i32 : i32, i32
  }
  func.func @transform_2(%arg0: i32) -> (i32, i32) {
    %c0_i32 = arith.constant 0 : i32
    %c0_i32_0 = arith.constant 0 : i32
    %c0_i32_1 = arith.constant 0 : i32
    return %c0_i32, %c0_i32_0 : i32, i32
  }
  func.func @transform_3(%arg0: i32) -> (i32, i32) {
    %c0_i32 = arith.constant 0 : i32
    %c0_i32_0 = arith.constant 0 : i32
    %c0_i32_1 = arith.constant 0 : i32
    return %c0_i32, %c0_i32_0 : i32, i32
  }
  func.func @transform_4(%arg0: i32) -> (i32, i32) {
    %c0_i32 = arith.constant 0 : i32
    %c0_i32_0 = arith.constant 0 : i32
    %c0_i32_1 = arith.constant 0 : i32
    return %c0_i32, %c0_i32_0 : i32, i32
  }
  func.func @transform_5(%arg0: i32) -> (i32, i32) {
    %c0_i32 = arith.constant 0 : i32
    %c0_i32_0 = arith.constant 0 : i32
    %c0_i32_1 = arith.constant 0 : i32
    return %c0_i32, %c0_i32_0 : i32, i32
  }
  func.func @transform_6(%arg0: i32) -> (i32, i32) {
    %c0_i32 = arith.constant 0 : i32
    %c0_i32_0 = arith.constant 0 : i32
    %c0_i32_1 = arith.constant 0 : i32
    return %c0_i32, %c0_i32_0 : i32, i32
  }
  func.func @transform_7(%arg0: i32) -> (i32, i32) {
    %c0_i32 = arith.constant 0 : i32
    %c0_i32_0 = arith.constant 0 : i32
    %c0_i32_1 = arith.constant 0 : i32
    return %c0_i32, %c0_i32_0 : i32, i32
  }
  func.func @transform_8(%arg0: i32) -> (i32, i32) {
    %c0_i32 = arith.constant 0 : i32
    %c0_i32_0 = arith.constant 0 : i32
    %c0_i32_1 = arith.constant 0 : i32
    return %c0_i32, %c0_i32_0 : i32, i32
  }
  func.func @transform_9(%arg0: i32) -> (i32, i32) {
    %c0_i32 = arith.constant 0 : i32
    %c0_i32_0 = arith.constant 0 : i32
    %c0_i32_1 = arith.constant 0 : i32
    return %c0_i32, %c0_i32_0 : i32, i32
  }
  func.func @transform_10(%arg0: i32) -> (i32, i32) {
    %c0_i32 = arith.constant 0 : i32
    %c0_i32_0 = arith.constant 0 : i32
    %c0_i32_1 = arith.constant 0 : i32
    return %c0_i32, %c0_i32_0 : i32, i32
  }
  func.func @transform_11(%arg0: i32) -> (i32, i32) {
    %c0_i32 = arith.constant 0 : i32
    %c0_i32_0 = arith.constant 0 : i32
    %c0_i32_1 = arith.constant 0 : i32
    return %c0_i32, %c0_i32_0 : i32, i32
  }
  func.func @transform_12(%arg0: i32) -> (i32, i32) {
    %c0_i32 = arith.constant 0 : i32
    %c0_i32_0 = arith.constant 0 : i32
    %c0_i32_1 = arith.constant 0 : i32
    return %c0_i32, %c0_i32_0 : i32, i32
  }
  func.func @transform_13(%arg0: i32) -> (i32, i32) {
    %c0_i32 = arith.constant 0 : i32
    %c0_i32_0 = arith.constant 0 : i32
    %c0_i32_1 = arith.constant 0 : i32
    return %c0_i32, %c0_i32_0 : i32, i32
  }
  func.func @transform_14(%arg0: i32) -> (i32, i32) {
    %c0_i32 = arith.constant 0 : i32
    %c0_i32_0 = arith.constant 0 : i32
    return %arg0, %c0_i32 : i32, i32
  }
  func.func @transform_15(%arg0: i32) -> (i32, i32) {
    %c0_i32 = arith.constant 0 : i32
    %c0_i32_0 = arith.constant 0 : i32
    return %arg0, %c0_i32 : i32, i32
  }
}

</mosaic_0001>

<bundles_post_ra>
// kernel: tpu_custom_call.1
= control target key start
LH: loop header
LB: loop body
LE: loop exit
PB: predicated region body
PF: predicated region fallthrough
CT: control target
= control target key end

     0   :  { %22 = vsyncpa [#allocation4], 0  ;;  %s1903_s0 = inlined_call_operand.<no memory space> [shape: f32[1], index: 0, kind: input, shape index: {}]   ;;  %s1904_s1 = inlined_call_operand.hbm [shape: bf16[16,128], index: 1, kind: input, shape index: {}]   ;;  %s1905_s2 = inlined_call_operand.hbm [shape: bf16[128,128], index: 2, kind: input, shape index: {}]   ;;  %s1906_s3 = inlined_call_operand.vmem [shape: f32[1,128], index: 3, kind: input, shape index: {}]   ;;  %s1907_s4 = inlined_call_operand.hbm [shape: bf16[128,128], index: 4, kind: input, shape index: {}]   ;;  %s1908_s5 = inlined_call_operand.vmem [shape: f32[1,128], index: 5, kind: input, shape index: {}]   ;;  %s1909_s6 = inlined_call_operand.hbm [shape: bf16[128,128], index: 6, kind: input, shape index: {}]   ;;  %s1910_s7 = inlined_call_operand.vmem [shape: f32[1,128], index: 7, kind: input, shape index: {}]   ;;  %s1911_s8 = inlined_call_operand.hbm [shape: bf16[128,128], index: 8, kind: input, shape index: {}]   ;;  %s1912_s9 = inlined_call_operand.vmem [shape: f32[1,128], index: 9, kind: input, shape index: {}]   ;;  %s1913_s10 = inlined_call_operand.hbm [shape: bf16[128,128], index: 10, kind: input, shape index: {}]   ;;  %s1914_s11 = inlined_call_operand.vmem [shape: f32[1,128], index: 11, kind: input, shape index: {}]   ;;  %s1915_s12 = inlined_call_operand.hbm [shape: bf16[128,128], index: 12, kind: input, shape index: {}]   ;;  %s1916_s13 = inlined_call_operand.vmem [shape: f32[1,128], index: 13, kind: input, shape index: {}]   ;;  %s1917_s14 = inlined_call_operand.hbm [shape: f32[16,128], index: 14, kind: output, shape index: {0}]   ;;  %s1918_s15 = inlined_call_operand.hbm [shape: s32[16,128], index: 15, kind: output, shape index: {1}]  }
   0x1   :  { %23 = vsyncpa [#allocation7], 0 }
   0x2   :  { %24 = vsyncpa [#allocation10], 0 }
   0x3   :  { %25 = vsyncpa [#allocation13], 0 }
   0x4   :  { %26 = vsyncpa [#allocation5], 0 }
   0x5   :  { %27 = vsyncpa [#allocation17], 0  ;;  %s1518_s18 = smov [#allocation6]   ;;  %s1519_s20 = smov [#allocation9]  }
   0x6   :  { %s47_s19 = sshll.u32 %s1518_s18, 4  ;;  %s75_s21 = sshll.u32 %s1519_s20, 4  ;;  %s48_s19 = int_to_ptr.vmem [resolvable:$true] %s47_s19  ;;  %s1620_s21 = int_to_ptr.vmem [resolvable:$true] %s75_s21 }
   0x7   :  { %s1308_s24 = scalar_lea.hbm %s1905_s2, 1024 }
   0x8   :  { %p1309_p0 = scmp.ne.s32.totalorder %s1905_s2, %s1308_s24  ;;  %p1312_p1 = scmp.lt.u32.totalorder %s1308_s24, %s1905_s2 }
   0xa   :  { %p1314_p2 = pnand %p1312_p1, %p1309_p0 }
   0xc   :  { %1317 = shalt.err (!%p1314_p2)
}
   0xd   :  { %s1318_s29 = scalar_lea.vmem %s48_s19, 1024  ;;  %p1323_p4 = scmp.lt.s32.totalorder %s48_s19, %s48_s19 }
   0xe   :  { %p1319_p3 = scmp.ne.s32.totalorder %s48_s19, %s1318_s29  ;;  %p1324_p5 = scmp.lt.s32.totalorder %s1318_s29, %s1318_s29 }
  0x10   :  { %p1325_p6 = por %p1324_p5, %p1323_p4 }
  0x12   :  { %p1326_p7 = pnand %p1325_p6, %p1319_p3 }
  0x14   :  { %1329 = shalt.err (!%p1326_p7)
}
  0x15   :  { %s1520_s30 = smov 64   ;;  %s1521_s16 = smov 4  }
  0x16   :  { %53 = dma.hbm_to_vmem [thread:$0]  %s1905_s2, 1024, %s48_s19, [#allocation7], %s1520_s30, %s1520_s30, %s1521_s16  }
  0x17   :  { %s1330_s23 = scalar_lea.hbm %s1909_s6, 1024 }
  0x18   :  { %p1331_p8 = scmp.ne.s32.totalorder %s1909_s6, %s1330_s23  ;;  %p1334_p9 = scmp.lt.u32.totalorder %s1330_s23, %s1909_s6 }
  0x1a   :  { %p1336_p10 = pnand %p1334_p9, %p1331_p8 }
  0x1c   :  { %1339 = shalt.err (!%p1336_p10)
}
  0x1d   :  { %s1340_s28 = scalar_lea.vmem %s1620_s21, 1024  ;;  %p1345_p12 = scmp.lt.s32.totalorder %s1620_s21, %s1620_s21 }
  0x1e   :  { %p1341_p11 = scmp.ne.s32.totalorder %s1620_s21, %s1340_s28  ;;  %p1346_p13 = scmp.lt.s32.totalorder %s1340_s28, %s1340_s28 }
  0x20   :  { %p1347_p0 = por %p1346_p13, %p1345_p12 }
  0x22   :  { %p1348_p1 = pnand %p1347_p0, %p1341_p11 }
  0x24   :  { %1351 = shalt.err (!%p1348_p1)
}
  0x25   :  { %81 = dma.hbm_to_vmem [thread:$0]  %s1909_s6, 1024, %s1620_s21, [#allocation10], %s1520_s30, %s1520_s30, %s1521_s16  }
  0x26   :  { %s1522_s29 = smov [#allocation12]   ;;  %s1523_s18 = smov [#allocation3]  }
  0x27   :  { %s103_s17 = sshll.u32 %s1522_s29, 4  ;;  %s35_s20 = sshll.u32 %s1523_s18, 4  ;;  %s104_s17 = int_to_ptr.vmem [resolvable:$true] %s103_s17  ;;  %s1657_s20 = int_to_ptr.vmem [resolvable:$true] %s35_s20 }
  0x28   :  { %s1352_s24 = scalar_lea.hbm %s1913_s10, 1024 }
  0x29   :  { %p1353_p2 = scmp.ne.s32.totalorder %s1913_s10, %s1352_s24  ;;  %p1356_p3 = scmp.lt.u32.totalorder %s1352_s24, %s1913_s10 }
  0x2b   :  { %p1358_p4 = pnand %p1356_p3, %p1353_p2 }
  0x2d   :  { %1361 = shalt.err (!%p1358_p4)
}
  0x2e   :  { %s1362_s6 = scalar_lea.vmem %s104_s17, 1024  ;;  %p1367_p6 = scmp.lt.s32.totalorder %s104_s17, %s104_s17 }
  0x2f   :  { %p1363_p5 = scmp.ne.s32.totalorder %s104_s17, %s1362_s6  ;;  %p1368_p7 = scmp.lt.s32.totalorder %s1362_s6, %s1362_s6 }
  0x31   :  { %p1369_p8 = por %p1368_p7, %p1367_p6 }
  0x33   :  { %p1370_p9 = pnand %p1369_p8, %p1363_p5 }
  0x35   :  { %1373 = shalt.err (!%p1370_p9)
}
  0x36   :  { %109 = dma.hbm_to_vmem [thread:$0]  %s1913_s10, 1024, %s104_s17, [#allocation13], %s1520_s30, %s1520_s30, %s1521_s16  }
  0x37   :  { %s1374_s18 = scalar_lea.hbm %s1904_s1, 128 }
  0x38   :  { %p1375_p10 = scmp.ne.s32.totalorder %s1904_s1, %s1374_s18  ;;  %p1378_p11 = scmp.lt.u32.totalorder %s1374_s18, %s1904_s1 }
  0x3a   :  { %p1380_p12 = pnand %p1378_p11, %p1375_p10 }
  0x3c   :  { %1383 = shalt.err (!%p1380_p12)
}
  0x3d   :  { %s1384_s26 = scalar_lea.vmem %s1657_s20, 128  ;;  %p1389_p0 = scmp.lt.s32.totalorder %s1657_s20, %s1657_s20 }
  0x3e   :  { %p1385_p13 = scmp.ne.s32.totalorder %s1657_s20, %s1384_s26  ;;  %p1390_p1 = scmp.lt.s32.totalorder %s1384_s26, %s1384_s26 }
  0x40   :  { %p1391_p2 = por %p1390_p1, %p1389_p0 }
  0x42   :  { %p1392_p3 = pnand %p1391_p2, %p1385_p13 }
  0x44   :  { %1395 = shalt.err (!%p1392_p3)
}
  0x45   :  { %41 = dma.hbm_to_vmem [thread:$0]  %s1904_s1, 128, %s1657_s20, [#allocation4], %s1520_s30, %s1520_s30, %s1521_s16  }
  0x46   :  { %s1524_s27 = smov [#allocation8]   ;;  %s1525_s6 = smov [#allocation11]  }
  0x47   :  { %s61_s28 = sshll.u32 %s1524_s27, 4  ;;  %s89_s21 = sshll.u32 %s1525_s6, 4  ;;  %s62_s28 = int_to_ptr.vmem [resolvable:$true] %s61_s28  ;;  %s1694_s21 = int_to_ptr.vmem [resolvable:$true] %s89_s21 }
  0x48   :  { %s1396_s29 = scalar_lea.hbm %s1907_s4, 1024 }
  0x49   :  { %p1397_p4 = scmp.ne.s32.totalorder %s1907_s4, %s1396_s29  ;;  %p1400_p5 = scmp.lt.u32.totalorder %s1396_s29, %s1907_s4 }
  0x4b   :  { %p1402_p6 = pnand %p1400_p5, %p1397_p4 }
  0x4d   :  { %1405 = shalt.err (!%p1402_p6)
}
  0x4e   :  { %s1406_s1 = scalar_lea.vmem %s62_s28, 1024  ;;  %p1411_p8 = scmp.lt.s32.totalorder %s62_s28, %s62_s28 }
  0x4f   :  { %p1407_p7 = scmp.ne.s32.totalorder %s62_s28, %s1406_s1  ;;  %p1412_p9 = scmp.lt.s32.totalorder %s1406_s1, %s1406_s1 }
  0x51   :  { %p1413_p10 = por %p1412_p9, %p1411_p8 }
  0x53   :  { %p1414_p11 = pnand %p1413_p10, %p1407_p7 }
  0x55   :  { %1417 = shalt.err (!%p1414_p11)
}
  0x56   :  { %67 = dma.hbm_to_vmem [thread:$0]  %s1907_s4, 1024, %s62_s28, [#allocation7], %s1520_s30, %s1520_s30, %s1521_s16  }
  0x57   :  { %s1418_s17 = scalar_lea.hbm %s1911_s8, 1024 }
  0x58   :  { %p1419_p12 = scmp.ne.s32.totalorder %s1911_s8, %s1418_s17  ;;  %p1422_p13 = scmp.lt.u32.totalorder %s1418_s17, %s1911_s8 }
  0x5a   :  { %p1424_p0 = pnand %p1422_p13, %p1419_p12 }
  0x5c   :  { %1427 = shalt.err (!%p1424_p0)
}
  0x5d   :  { %s1428_s29 = scalar_lea.vmem %s1694_s21, 1024  ;;  %p1433_p2 = scmp.lt.s32.totalorder %s1694_s21, %s1694_s21 }
  0x5e   :  { %p1429_p1 = scmp.ne.s32.totalorder %s1694_s21, %s1428_s29  ;;  %p1434_p3 = scmp.lt.s32.totalorder %s1428_s29, %s1428_s29 }
  0x60   :  { %p1435_p4 = por %p1434_p3, %p1433_p2 }
  0x62   :  { %p1436_p5 = pnand %p1435_p4, %p1429_p1 }
  0x64   :  { %1439 = shalt.err (!%p1436_p5)
}
  0x65   :  { %95 = dma.hbm_to_vmem [thread:$0]  %s1911_s8, 1024, %s1694_s21, [#allocation10], %s1520_s30, %s1520_s30, %s1521_s16  }
  0x66   :  { %s1526_s18 = smov [#allocation14]   ;;  %s1440_s1 = scalar_lea.hbm %s1915_s12, 1024 }
  0x67   :  { %s117_s22 = sshll.u32 %s1526_s18, 4  ;;  %p1441_p6 = scmp.ne.s32.totalorder %s1915_s12, %s1440_s1  ;;  %s118_s22 = int_to_ptr.vmem [resolvable:$true] %s117_s22 }
  0x68   :  { %p1444_p7 = scmp.lt.u32.totalorder %s1440_s1, %s1915_s12 }
  0x6a   :  { %p1446_p8 = pnand %p1444_p7, %p1441_p6 }
  0x6c   :  { %1449 = shalt.err (!%p1446_p8)
}
  0x6d   :  { %s1450_s17 = scalar_lea.vmem %s118_s22, 1024  ;;  %p1455_p10 = scmp.lt.s32.totalorder %s118_s22, %s118_s22 }
  0x6e   :  { %p1451_p9 = scmp.ne.s32.totalorder %s118_s22, %s1450_s17  ;;  %p1456_p11 = scmp.lt.s32.totalorder %s1450_s17, %s1450_s17 }
  0x70   :  { %p1457_p12 = por %p1456_p11, %p1455_p10 }
  0x72   :  { %p1458_p13 = pnand %p1457_p12, %p1451_p9 }
  0x74   :  { %1461 = shalt.err (!%p1458_p13)
}
  0x75   :  { %123 = dma.hbm_to_vmem [thread:$0]  %s1915_s12, 1024, %s118_s22, [#allocation13], %s1520_s30, %s1520_s30, %s1521_s16  }
  0x76   :  { %1506 = dma.done.wait [#allocation4], 128  }
  0x77   :  { %1507 = vsyncadd [#allocation4], 4294967168 }
  0x78   :  { %1508 = dma.done.wait [#allocation7], 2048  }
  0x79   :  { %1509 = vsyncadd [#allocation7], 4294965248 }
  0x7a   :  { %1510 = dma.done.wait [#allocation10], 2048  }
  0x7b   :  { %1511 = vsyncadd [#allocation10], 4294965248 }
  0x7c   :  { %1512 = dma.done.wait [#allocation13], 2048  }
  0x7d   :  { %1513 = vsyncadd [#allocation13], 4294965248  ;;  %v1527_v0 = vmov 0   ;;  %v1528_v1 = vmov 0.0   ;;  %vm1529_vm0 = vmmov 0   ;;  %v1251_v2 = vld [vmem:[#allocation6] sm:$0xff]   ;;  %v1776_v44 = vstv %s1903_s0 }
  0x7e   :  { %403 = vst [vmem:[#allocation16] sm:$0xff] %v1527_v0  ;;  %404 = vst [vmem:[#allocation16 + $0x8] sm:$0xff] %v1527_v0  ;;  %1105 = vmatprep.subr.bf16.mxu0 %v1528_v1  ;;  %1121 = vmatprep.mubr.msk.bf16.mxu0 %vm1529_vm0, %v1528_v1  ;;  %v1252_v3 = vld [vmem:[#allocation6 + $0x8] sm:$0xff]   ;;  %v1253_v4 = vld [vmem:[#allocation6 + $0x10] sm:$0xff]   ;;  %vm1530_vm2 = vmmov 1   ;;  %vm411_vm5 = vcmask 7168  }
  0x7f   :  { %1125 = vmatprep.subr.bf16.mxu1 %v1528_v1  ;;  %1141 = vmatprep.mubr.msk.bf16.mxu1 %vm1529_vm0, %v1528_v1  ;;  %v1260_v5 = vld [vmem:[#allocation11] sm:$0xff]   ;;  %v1254_v6 = vld [vmem:[#allocation6 + $0x18] sm:$0xff]   ;;  %v1261_v7 = vld [vmem:[#allocation11 + $0x8] sm:$0xff]  }
  0x80   :  { %1106 = vmatpush3.bf16.msra.mxu0 %v1251_v2  ;;  %1126 = vmatpush3.bf16.msra.mxu1 %v1260_v5  ;;  %v1255_v8 = vld [vmem:[#allocation6 + $0x20] sm:$0xff]   ;;  %v1262_v9 = vld [vmem:[#allocation11 + $0x10] sm:$0xff]   ;;  %v1256_v10 = vld [vmem:[#allocation6 + $0x28] sm:$0xff]  }
  0x81   :  { %1107 = vmatprep.subr.bf16.mxu0 %v1528_v1  ;;  %1127 = vmatprep.subr.bf16.mxu1 %v1528_v1  ;;  %v1263_v11 = vld [vmem:[#allocation11 + $0x18] sm:$0xff]   ;;  %v1257_v12 = vld [vmem:[#allocation6 + $0x30] sm:$0xff]   ;;  %v1264_v13 = vld [vmem:[#allocation11 + $0x20] sm:$0xff]  }
  0x82   :  { %v1258_v14 = vld [vmem:[#allocation6 + $0x38] sm:$0xff]   ;;  %v1265_v15 = vld [vmem:[#allocation11 + $0x28] sm:$0xff]   ;;  %v1266_v17 = vld [vmem:[#allocation11 + $0x30] sm:$0xff]  }
  0x83   :  { %v1259_v16 = vld [vmem:[#allocation3] sm:$0xff]  }
  0x84   :  { %1108 = vmatpush3.bf16.msra.mxu0 %v1252_v3  ;;  %1128 = vmatpush3.bf16.msra.mxu1 %v1261_v7  ;;  %v1267_v18 = vld [vmem:[#allocation11 + $0x38] sm:$0xff]  }
  0x85   :  { %1109 = vmatprep.subr.bf16.mxu0 %v1528_v1  ;;  %1129 = vmatprep.subr.bf16.mxu1 %v1528_v1  ;;  %v992_v19 = vld [vmem:[%s1906_s3] ss:$0 sm:$0xff] }
  0x86   :  { %v1002_v29 = vld [vmem:[%s1912_s9] ss:$0 sm:$0xff] }
  0x88   :  { %1110 = vmatpush3.bf16.msra.mxu0 %v1253_v4  ;;  %1130 = vmatpush3.bf16.msra.mxu1 %v1262_v9 }
  0x89   :  { %1111 = vmatprep.subr.bf16.mxu0 %v1528_v1  ;;  %1131 = vmatprep.subr.bf16.mxu1 %v1528_v1 }
  0x8c   :  { %1112 = vmatpush3.bf16.msra.mxu0 %v1254_v6  ;;  %1132 = vmatpush3.bf16.msra.mxu1 %v1263_v11 }
  0x8d   :  { %1113 = vmatprep.subr.bf16.mxu0 %v1528_v1  ;;  %1133 = vmatprep.subr.bf16.mxu1 %v1528_v1 }
  0x90   :  { %1114 = vmatpush3.bf16.msra.mxu0 %v1255_v8  ;;  %1134 = vmatpush3.bf16.msra.mxu1 %v1264_v13 }
  0x91   :  { %1115 = vmatprep.subr.bf16.mxu0 %v1528_v1  ;;  %1135 = vmatprep.subr.bf16.mxu1 %v1528_v1 }
  0x94   :  { %1116 = vmatpush3.bf16.msra.mxu0 %v1256_v10  ;;  %1136 = vmatpush3.bf16.msra.mxu1 %v1265_v15 }
  0x95   :  { %1117 = vmatprep.subr.bf16.mxu0 %v1528_v1  ;;  %1137 = vmatprep.subr.bf16.mxu1 %v1528_v1 }
  0x98   :  { %1118 = vmatpush3.bf16.msra.mxu0 %v1257_v12  ;;  %1138 = vmatpush3.bf16.msra.mxu1 %v1266_v17 }
  0x99   :  { %1119 = vmatprep.subr.bf16.mxu0 %v1528_v1  ;;  %1139 = vmatprep.subr.bf16.mxu1 %v1528_v1 }
  0x9c   :  { %1120 = vmatpush3.bf16.msra.mxu0 %v1258_v14  ;;  %1140 = vmatpush3.bf16.msra.mxu1 %v1267_v18 }
  0x9f   :  { %1122 = vmatmul.mubr.bf16.vlgmr.msra.gmra.mrb[0].mxu0 %v1259_v16 }
 0x172   :  { %v262_v20 = vpop.f32.mrb[0].mxu0 }
 0x173   :  { %v263_v21 = vadd.f32 %v992_v19, %v262_v20  ;;  %v1123_v22 = vpop.f32.mrb[1].mxu0 }
 0x174   :  { %v265_v23 = vpop.f32.mrb[2].mxu0 }
 0x175   :  { %v266_v24 = vadd.f32 %v992_v19, %v265_v23  ;;  %v1124_v25 = vpop.f32.mrb[3].mxu0  ;;  %v269_v26 = vmax.f32 %v263_v21, 0.0 }
 0x177   :  { %v270_v27 = vmax.f32 %v266_v24, 0.0 }
 0x179   :  { %v1767_v28 = vpack.c.bf16 %v270_v27, %v269_v26 }
 0x17b   :  { %1142 = vmatmul.mubr.bf16.vlgmr.msra.gmra.mrb[0].mxu1 %v1767_v28 }
 0x24e   :  { %v377_v30 = vpop.f32.mrb[0].mxu1 }
 0x24f   :  { %v378_v31 = vadd.f32 %v1002_v29, %v377_v30  ;;  %v1143_v32 = vpop.f32.mrb[1].mxu1 }
 0x250   :  { %v380_v33 = vpop.f32.mrb[2].mxu1 }
 0x251   :  { %401 = vst [vmem:[#allocation15] sm:$0xff] %v378_v31  ;;  %v381_v34 = vadd.f32 %v1002_v29, %v380_v33  ;;  %384 = vmax.xlane.f32.xlu0 %v378_v31  ;;  %v1144_v35 = vpop.f32.mrb[3].mxu1 }
 0x253   :  { %402 = vst [vmem:[#allocation15 + $0x8] sm:$0xff] %v381_v34 }
 0x255   :  { %386 = vmax.xlane.f32.xlu0 %v381_v34 }
 0x2de   :  { %v385_v36 = vpop.xlane.xlu0 %384 }
 0x2df   :  { %v388_v37 = vsub.f32 %v378_v31, %v385_v36 }
 0x2e1   :  { %v390_v38 = vmul.f32 1.442695, %v388_v37 }
 0x2e2   :  { %v387_v39 = vpop.xlane.xlu0 %386 }
 0x2e3   :  { %1268 = vpow2.f32 %v390_v38  ;;  %v389_v40 = vsub.f32 %v381_v34, %v387_v39 }
 0x2e5   :  { %v392_v41 = vmul.f32 1.442695, %v389_v40 }
 0x2e7   :  { %1270 = vpow2.f32 %v392_v41 }
 0x2ed   :  { %v1269_v42 = vpop.eup %1268 }
 0x2ee   :  { %394 = vadd.xlane.f32.xlu1 %v1269_v42 }
 0x2f1   :  { %v1271_v43 = vpop.eup %1270 }
 0x2f2   :  { %396 = vadd.xlane.f32.xlu1 %v1271_v43 }
 0x37b   :  { %v1778_v45 = vpop.xlane.xlu1 %394 }
 0x37c   :  { %vm399_vm1 = vcmp.le.f32.partialorder %v1778_v45, %v1776_v44 }
 0x37d   :  { %vm1785_vm3 = vmxor %vm399_vm1, %vm1530_vm2 }
 0x37e   :  { %v1011_v48 = vsel %vm1785_vm3, 1.0, %v1528_v1 }
 0x37f   :  { %v1789_v47 = vpop.xlane.xlu1 %396  ;;  %v412_v51 = vsel %vm411_vm5, %v1011_v48, 0.0 }
 0x380   :  { %vm400_vm4 = vcmp.le.f32.partialorder %v1789_v47, %v1776_v44 }
 0x381   :  { %vm1799_vm6 = vmxor %vm400_vm4, %vm1530_vm2 }
 0x382   :  { %v1012_v50 = vsel %vm1799_vm6, 1.0, %v1528_v1 }
 0x383   :  { %v413_v52 = vsel %vm411_vm5, %v1012_v50, 0.0 }
 0x384   :  { %v414_v53 = vadd.f32 %v413_v52, %v412_v51 }
 0x386   :  { %415 = vadd.xlane.f32.xlu0 %v414_v53 }
 0x413   :  { %v416_v54 = vpop.xlane.xlu0 %415 }
 0x414   :  { %v417_v55 = vrot.slane %v416_v54, 4 }
 0x416   :  { %v418_v56 = vadd.f32 %v417_v55, %v416_v54 }
 0x418   :  { %v419_v57 = vrot.slane %v418_v56, 2 }
 0x41a   :  { %v420_v58 = vadd.f32 %v419_v57, %v418_v56 }
 0x41c   :  { %v421_v59 = vrot.slane %v420_v58, 1 }
 0x41e   :  { %v422_v60 = vadd.f32 %v421_v59, %v420_v58 }
 0x420   :  { %1225 = vpush %v422_v60 }
 0x451   :  { %s1226_s0 = spop %1225 }
 0x452   :  { %p424_p0 = scmp.gt.f32.partialorder %s1226_s0, 0.0 }
 0x453   :  { %v1272_v61 = vld [vmem:[#allocation8] sm:$0xff] (%p424_p0)   ;;  %v1531_v62 = vmov (%p424_p0), 0.0   ;;  %v1273_v63 = vld [vmem:[#allocation8 + $0x8] sm:$0xff] (%p424_p0)   ;;  %vm1532_vm7 = vmmov (%p424_p0), 0   ;;  %v1274_v0 = vld [vmem:[#allocation8 + $0x10] sm:$0xff] (%p424_p0)   ;;  %vm1533_vm11 = vmmov (%p424_p0), 1  }
 0x454   :  { %427 = sbr.rel (!%p424_p0) target bundleno = 2562 (0xa02), region = 89  ;;  %1145 = vmatprep.subr.bf16.mxu0 (%p424_p0), %v1531_v62  ;;  %1165 = vmatprep.subr.bf16.mxu1 (%p424_p0), %v1531_v62  ;;  %v1280_v1 = vld [vmem:[#allocation12] sm:$0xff] (%p424_p0)   ;;  %v1275_v2 = vld [vmem:[#allocation8 + $0x18] sm:$0xff] (%p424_p0)   ;;  %v1281_v3 = vld [vmem:[#allocation12 + $0x8] sm:$0xff] (%p424_p0)  }
 0x455   :  { %1146 = vmatpush3.bf16.msra.mxu0 (%p424_p0), %v1272_v61  ;;  %1161 = vmatprep.mubr.msk.bf16.mxu0 (%p424_p0), %vm1532_vm7, %v1531_v62  ;;  %v1276_v4 = vld [vmem:[#allocation8 + $0x20] sm:$0xff] (%p424_p0)   ;;  %v1282_v5 = vld [vmem:[#allocation12 + $0x10] sm:$0xff] (%p424_p0)   ;;  %v1277_v6 = vld [vmem:[#allocation8 + $0x28] sm:$0xff] (%p424_p0)  }
 0x456   :  { %1147 = vmatprep.subr.bf16.mxu0 (%p424_p0), %v1531_v62  ;;  %1181 = vmatprep.mubr.msk.bf16.mxu1 (%p424_p0), %vm1532_vm7, %v1531_v62  ;;  %v1283_v7 = vld [vmem:[#allocation12 + $0x18] sm:$0xff] (%p424_p0)   ;;  %v1278_v8 = vld [vmem:[#allocation8 + $0x30] sm:$0xff] (%p424_p0)   ;;  %v1284_v9 = vld [vmem:[#allocation12 + $0x20] sm:$0xff] (%p424_p0)  }
 0x457   :  { %1166 = vmatpush3.bf16.msra.mxu1 (%p424_p0), %v1280_v1  ;;  %v1279_v10 = vld [vmem:[#allocation8 + $0x38] sm:$0xff] (%p424_p0)   ;;  %v1285_v11 = vld [vmem:[#allocation12 + $0x28] sm:$0xff] (%p424_p0)   ;;  %v1286_v12 = vld [vmem:[#allocation12 + $0x30] sm:$0xff] (%p424_p0)  }
 0x458   :  { %1167 = vmatprep.subr.bf16.mxu1 (%p424_p0), %v1531_v62  ;;  %v1287_v13 = vld [vmem:[#allocation12 + $0x38] sm:$0xff] (%p424_p0)   ;;  %v673_v39 = vld [vmem:[#allocation15] sm:$0xff] (%p424_p0)  ;;  %v683_v40 = vld [vmem:[#allocation16] sm:$0xff] (%p424_p0) }
 0x459   :  { %1148 = vmatpush3.bf16.msra.mxu0 (%p424_p0), %v1273_v63  ;;  %v1013_v14 = vld [vmem:[%s1908_s5] ss:$0 sm:$0xff] (%p424_p0)  ;;  %v674_v50 = vld [vmem:[#allocation15 + $0x8] sm:$0xff] (%p424_p0) }
 0x45a   :  { %1149 = vmatprep.subr.bf16.mxu0 (%p424_p0), %v1531_v62  ;;  %v1022_v24 = vld [vmem:[%s1914_s11] ss:$0 sm:$0xff] (%p424_p0) }
 0x45b   :  { %1168 = vmatpush3.bf16.msra.mxu1 %v1281_v3  ;;  %v684_v51 = vld [vmem:[#allocation16 + $0x8] sm:$0xff] }
 0x45c   :  { %1169 = vmatprep.subr.bf16.mxu1 %v1531_v62 }
 0x45d   :  { %1150 = vmatpush3.bf16.msra.mxu0 %v1274_v0 }
 0x45e   :  { %1151 = vmatprep.subr.bf16.mxu0 %v1531_v62 }
 0x45f   :  { %1170 = vmatpush3.bf16.msra.mxu1 %v1282_v5 }
 0x460   :  { %1171 = vmatprep.subr.bf16.mxu1 %v1531_v62 }
 0x461   :  { %1152 = vmatpush3.bf16.msra.mxu0 %v1275_v2 }
 0x462   :  { %1153 = vmatprep.subr.bf16.mxu0 %v1531_v62 }
 0x463   :  { %1172 = vmatpush3.bf16.msra.mxu1 %v1283_v7 }
 0x464   :  { %1173 = vmatprep.subr.bf16.mxu1 %v1531_v62 }
 0x465   :  { %1154 = vmatpush3.bf16.msra.mxu0 %v1276_v4 }
 0x466   :  { %1155 = vmatprep.subr.bf16.mxu0 %v1531_v62 }
 0x467   :  { %1174 = vmatpush3.bf16.msra.mxu1 %v1284_v9 }
 0x468   :  { %1175 = vmatprep.subr.bf16.mxu1 %v1531_v62 }
 0x469   :  { %1156 = vmatpush3.bf16.msra.mxu0 %v1277_v6 }
 0x46a   :  { %1157 = vmatprep.subr.bf16.mxu0 %v1531_v62 }
 0x46b   :  { %1176 = vmatpush3.bf16.msra.mxu1 %v1285_v11 }
 0x46c   :  { %1177 = vmatprep.subr.bf16.mxu1 %v1531_v62 }
 0x46d   :  { %1158 = vmatpush3.bf16.msra.mxu0 %v1278_v8 }
 0x46e   :  { %1159 = vmatprep.subr.bf16.mxu0 %v1531_v62 }
 0x46f   :  { %1178 = vmatpush3.bf16.msra.mxu1 %v1286_v12 }
 0x470   :  { %1179 = vmatprep.subr.bf16.mxu1 %v1531_v62 }
 0x471   :  { %1160 = vmatpush3.bf16.msra.mxu0 %v1279_v10 }
 0x473   :  { %1180 = vmatpush3.bf16.msra.mxu1 %v1287_v13 }
 0x474   :  { %1162 = vmatmul.mubr.bf16.vlgmr.msra.gmra.mrb[0].mxu0 %v1767_v28 }
 0x547   :  { %v533_v15 = vpop.f32.mrb[0].mxu0 }
 0x548   :  { %v534_v16 = vadd.f32 %v1013_v14, %v533_v15  ;;  %v1163_v17 = vpop.f32.mrb[1].mxu0 }
 0x549   :  { %v536_v18 = vpop.f32.mrb[2].mxu0 }
 0x54a   :  { %v537_v19 = vadd.f32 %v1013_v14, %v536_v18  ;;  %v1164_v20 = vpop.f32.mrb[3].mxu0  ;;  %v540_v21 = vmax.f32 %v534_v16, 0.0 }
 0x54c   :  { %v541_v22 = vmax.f32 %v537_v19, 0.0 }
 0x54e   :  { %v1830_v23 = vpack.c.bf16 %v541_v22, %v540_v21 }
 0x550   :  { %1182 = vmatmul.mubr.bf16.vlgmr.msra.gmra.mrb[0].mxu1 %v1830_v23 }
 0x623   :  { %v648_v25 = vpop.f32.mrb[0].mxu1 }
 0x624   :  { %v649_v26 = vadd.f32 %v1022_v24, %v648_v25  ;;  %v1183_v27 = vpop.f32.mrb[1].mxu1 }
 0x625   :  { %v651_v28 = vpop.f32.mrb[2].mxu1 }
 0x626   :  { %655 = vmax.xlane.f32.xlu0 %v649_v26  ;;  %v1184_v29 = vpop.f32.mrb[3].mxu1  ;;  %v652_v30 = vadd.f32 %v1022_v24, %v651_v28 }
 0x62a   :  { %657 = vmax.xlane.f32.xlu0 %v652_v30 }
 0x6b3   :  { %v656_v31 = vpop.xlane.xlu0 %655 }
 0x6b4   :  { %v659_v32 = vsub.f32 %v649_v26, %v656_v31 }
 0x6b6   :  { %v661_v33 = vmul.f32 1.442695, %v659_v32 }
 0x6b7   :  { %v658_v34 = vpop.xlane.xlu0 %657 }
 0x6b8   :  { %1288 = vpow2.f32 %v661_v33  ;;  %v660_v35 = vsub.f32 %v652_v30, %v658_v34 }
 0x6ba   :  { %v663_v36 = vmul.f32 1.442695, %v660_v35 }
 0x6bc   :  { %1290 = vpow2.f32 %v663_v36 }
 0x6c2   :  { %v1289_v37 = vpop.eup %1288 }
 0x6c3   :  { %665 = vadd.xlane.f32.xlu1 %v1289_v37 }
 0x6c6   :  { %v1291_v38 = vpop.eup %1290 }
 0x6c7   :  { %667 = vadd.xlane.f32.xlu1 %v1291_v38 }
 0x750   :  { %v666_v41 = vpop.xlane.xlu1 %665 }
 0x751   :  { %vm669_vm8 = vcmp.le.f32.partialorder %v666_v41, %v1776_v44 }
 0x752   :  { %vm671_vm9 = vmand %vm1785_vm3, %vm669_vm8 }
 0x753   :  { %v679_v42 = vsel %vm671_vm9, %v649_v26, %v673_v39  ;;  %v685_v43 = vsel %vm671_vm9, 1, %v683_v40  ;;  %vm1842_vm10 = vmor %vm399_vm1, %vm671_vm9 }
 0x754   :  { %681 = vst [vmem:[#allocation15] sm:$0xff] %v679_v42  ;;  %687 = vst [vmem:[#allocation16] sm:$0xff] %v685_v43  ;;  %v668_v52 = vpop.xlane.xlu1 %667 }
 0x755   :  { %vm691_vm12 = vmxor %vm1842_vm10, %vm1533_vm11  ;;  %vm670_vm13 = vcmp.le.f32.partialorder %v668_v52, %v1776_v44 }
 0x756   :  { %vm672_vm14 = vmand %vm1799_vm6, %vm670_vm13  ;;  %v1031_v54 = vsel %vm691_vm12, 1.0, %v1531_v62 }
 0x757   :  { %v680_v46 = vsel %vm672_vm14, %v652_v30, %v674_v50  ;;  %v686_v45 = vsel %vm672_vm14, 1, %v684_v51  ;;  %vm1854_vm15 = vmor %vm400_vm4, %vm672_vm14  ;;  %v697_v49 = vsel %vm411_vm5, %v1031_v54, 0.0 }
 0x758   :  { %682 = vst [vmem:[#allocation15 + $0x8] sm:$0xff] %v680_v46  ;;  %688 = vst [vmem:[#allocation16 + $0x8] sm:$0xff] %v686_v45 }
 0x759   :  { %vm692_vm0 = vmxor %vm1854_vm15, %vm1533_vm11 }
 0x75a   :  { %v1032_v55 = vsel %vm692_vm0, 1.0, %v1531_v62 }
 0x75b   :  { %v698_v56 = vsel %vm411_vm5, %v1032_v55, 0.0 }
 0x75c   :  { %v699_v57 = vadd.f32 %v698_v56, %v697_v49 }
 0x75e   :  { %700 = vadd.xlane.f32.xlu0 %v699_v57 }
 0x7eb   :  { %v701_v44 = vpop.xlane.xlu0 %700 }
 0x7ec   :  { %v702_v47 = vrot.slane %v701_v44, 4 }
 0x7ee   :  { %v703_v58 = vadd.f32 %v702_v47, %v701_v44 }
 0x7f0   :  { %v704_v59 = vrot.slane %v703_v58, 2 }
 0x7f2   :  { %v705_v60 = vadd.f32 %v704_v59, %v703_v58 }
 0x7f4   :  { %v706_v61 = vrot.slane %v705_v60, 1 }
 0x7f6   :  { %v707_v63 = vadd.f32 %v706_v61, %v705_v60 }
 0x7f8   :  { %1227 = vpush %v707_v63 }
 0x829   :  { %s1228_s5 = spop %1227 }
 0x82a   :  { %p709_p1 = scmp.gt.f32.partialorder %s1228_s5, 0.0 }
 0x82b   :  { %v1292_v0 = vld [vmem:[#allocation9] sm:$0xff] (%p709_p1)   ;;  %v1534_v1 = vmov (%p709_p1), 0.0   ;;  %v1293_v62 = vld [vmem:[#allocation9 + $0x8] sm:$0xff] (%p709_p1)   ;;  %vm1535_vm1 = vmmov (%p709_p1), 0   ;;  %v1294_v2 = vld [vmem:[#allocation9 + $0x10] sm:$0xff] (%p709_p1)  }
 0x82c   :  { %712 = sbr.rel (!%p709_p1) target bundleno = 2562 (0xa02), region = 93  ;;  %1185 = vmatprep.subr.bf16.mxu0 (%p709_p1), %v1534_v1  ;;  %1205 = vmatprep.subr.bf16.mxu1 (%p709_p1), %v1534_v1  ;;  %v1300_v3 = vld [vmem:[#allocation14] sm:$0xff] (%p709_p1)   ;;  %v1295_v4 = vld [vmem:[#allocation9 + $0x18] sm:$0xff] (%p709_p1)   ;;  %v1301_v5 = vld [vmem:[#allocation14 + $0x8] sm:$0xff] (%p709_p1)  }
 0x82d   :  { %1186 = vmatpush3.bf16.msra.mxu0 (%p709_p1), %v1292_v0  ;;  %1201 = vmatprep.mubr.msk.bf16.mxu0 (%p709_p1), %vm1535_vm1, %v1534_v1  ;;  %v1296_v6 = vld [vmem:[#allocation9 + $0x20] sm:$0xff] (%p709_p1)   ;;  %v1302_v7 = vld [vmem:[#allocation14 + $0x10] sm:$0xff] (%p709_p1)   ;;  %v1297_v8 = vld [vmem:[#allocation9 + $0x28] sm:$0xff] (%p709_p1)  }
 0x82e   :  { %1187 = vmatprep.subr.bf16.mxu0 (%p709_p1), %v1534_v1  ;;  %1221 = vmatprep.mubr.msk.bf16.mxu1 (%p709_p1), %vm1535_vm1, %v1534_v1  ;;  %v1303_v9 = vld [vmem:[#allocation14 + $0x18] sm:$0xff] (%p709_p1)   ;;  %v1298_v10 = vld [vmem:[#allocation9 + $0x30] sm:$0xff] (%p709_p1)   ;;  %v1304_v11 = vld [vmem:[#allocation14 + $0x20] sm:$0xff] (%p709_p1)  }
 0x82f   :  { %1206 = vmatpush3.bf16.msra.mxu1 (%p709_p1), %v1300_v3  ;;  %v1299_v12 = vld [vmem:[#allocation9 + $0x38] sm:$0xff] (%p709_p1)   ;;  %v1305_v13 = vld [vmem:[#allocation14 + $0x28] sm:$0xff] (%p709_p1)   ;;  %v1306_v14 = vld [vmem:[#allocation14 + $0x30] sm:$0xff] (%p709_p1)  }
 0x830   :  { %1207 = vmatprep.subr.bf16.mxu1 (%p709_p1), %v1534_v1  ;;  %v1307_v15 = vld [vmem:[#allocation14 + $0x38] sm:$0xff] (%p709_p1)   ;;  %v940_v32 = vld [vmem:[#allocation15] sm:$0xff] (%p709_p1)  ;;  %v941_v36 = vld [vmem:[#allocation15 + $0x8] sm:$0xff] (%p709_p1) }
 0x831   :  { %1188 = vmatpush3.bf16.msra.mxu0 (%p709_p1), %v1293_v62  ;;  %v1033_v16 = vld [vmem:[%s1910_s7] ss:$0 sm:$0xff] (%p709_p1) }
 0x832   :  { %1189 = vmatprep.subr.bf16.mxu0 (%p709_p1), %v1534_v1  ;;  %v951_v27 = vld [vmem:[#allocation16 + $0x8] sm:$0xff] (%p709_p1) }
 0x833   :  { %1208 = vmatpush3.bf16.msra.mxu1 %v1301_v5  ;;  %v953_v29 = vsel %vm1854_vm15, %v951_v27, 2  ;;  %v1042_v30 = vld [vmem:[%s1916_s13] ss:$0 sm:$0xff] }
 0x834   :  { %1209 = vmatprep.subr.bf16.mxu1 %v1534_v1  ;;  %955 = vst [vmem:[#allocation16 + $0x8] sm:$0xff] %v953_v29 }
 0x835   :  { %1190 = vmatpush3.bf16.msra.mxu0 %v1294_v2 }
 0x836   :  { %1191 = vmatprep.subr.bf16.mxu0 %v1534_v1 }
 0x837   :  { %1210 = vmatpush3.bf16.msra.mxu1 %v1302_v7 }
 0x838   :  { %1211 = vmatprep.subr.bf16.mxu1 %v1534_v1 }
 0x839   :  { %1192 = vmatpush3.bf16.msra.mxu0 %v1295_v4 }
 0x83a   :  { %1193 = vmatprep.subr.bf16.mxu0 %v1534_v1 }
 0x83b   :  { %1212 = vmatpush3.bf16.msra.mxu1 %v1303_v9 }
 0x83c   :  { %1213 = vmatprep.subr.bf16.mxu1 %v1534_v1 }
 0x83d   :  { %1194 = vmatpush3.bf16.msra.mxu0 %v1296_v6 }
 0x83e   :  { %1195 = vmatprep.subr.bf16.mxu0 %v1534_v1 }
 0x83f   :  { %1214 = vmatpush3.bf16.msra.mxu1 %v1304_v11 }
 0x840   :  { %1215 = vmatprep.subr.bf16.mxu1 %v1534_v1 }
 0x841   :  { %1196 = vmatpush3.bf16.msra.mxu0 %v1297_v8 }
 0x842   :  { %1197 = vmatprep.subr.bf16.mxu0 %v1534_v1 }
 0x843   :  { %1216 = vmatpush3.bf16.msra.mxu1 %v1305_v13 }
 0x844   :  { %1217 = vmatprep.subr.bf16.mxu1 %v1534_v1 }
 0x845   :  { %1198 = vmatpush3.bf16.msra.mxu0 %v1298_v10 }
 0x846   :  { %1199 = vmatprep.subr.bf16.mxu0 %v1534_v1 }
 0x847   :  { %1218 = vmatpush3.bf16.msra.mxu1 %v1306_v14 }
 0x848   :  { %1219 = vmatprep.subr.bf16.mxu1 %v1534_v1 }
 0x849   :  { %1200 = vmatpush3.bf16.msra.mxu0 %v1299_v12 }
 0x84b   :  { %1220 = vmatpush3.bf16.msra.mxu1 %v1307_v15 }
 0x84c   :  { %1202 = vmatmul.mubr.bf16.vlgmr.msra.gmra.mrb[0].mxu0 %v1830_v23  ;;  %v950_v23 = vld [vmem:[#allocation16] sm:$0xff] }
 0x84d   :  { %v952_v28 = vsel %vm1842_vm10, %v950_v23, 2 }
 0x84e   :  { %954 = vst [vmem:[#allocation16] sm:$0xff] %v952_v28 }
 0x91f   :  { %v818_v17 = vpop.f32.mrb[0].mxu0 }
 0x920   :  { %v819_v18 = vadd.f32 %v1033_v16, %v818_v17  ;;  %v1203_v19 = vpop.f32.mrb[1].mxu0 }
 0x921   :  { %v821_v20 = vpop.f32.mrb[2].mxu0 }
 0x922   :  { %v822_v21 = vadd.f32 %v1033_v16, %v821_v20  ;;  %v1204_v22 = vpop.f32.mrb[3].mxu0  ;;  %v825_v24 = vmax.f32 %v819_v18, 0.0 }
 0x924   :  { %v826_v25 = vmax.f32 %v822_v21, 0.0 }
 0x926   :  { %v827_v26 = vpack.c.bf16 %v826_v25, %v825_v24 }
 0x928   :  { %1222 = vmatmul.mubr.bf16.vlgmr.msra.gmra.mrb[0].mxu1 %v827_v26 }
 0x9fb   :  { %v933_v31 = vpop.f32.mrb[0].mxu1 }
 0x9fc   :  { %v934_v33 = vadd.f32 %v1042_v30, %v933_v31  ;;  %v1223_v34 = vpop.f32.mrb[1].mxu1 }
 0x9fd   :  { %v936_v35 = vpop.f32.mrb[2].mxu1 }
 0x9fe   :  { %v946_v37 = vsel %vm1842_vm10, %v940_v32, %v934_v33  ;;  %v937_v38 = vadd.f32 %v1042_v30, %v936_v35  ;;  %v1224_v39 = vpop.f32.mrb[3].mxu1 }
 0x9ff   :  { %948 = vst [vmem:[#allocation15] sm:$0xff] %v946_v37 }
 0xa00   :  { %v947_v40 = vsel %vm1854_vm15, %v941_v36, %v937_v38 }
 0xa01   :  { %949 = vst [vmem:[#allocation15 + $0x8] sm:$0xff] %v947_v40 }
 0xa02 PF:  { %s1536_s18 = smov [#allocation15]  }
 0xa03   :  { %s961_s13 = sshll.u32 %s1536_s18, 4  ;;  %s962_s13 = int_to_ptr.vmem [resolvable:$true] %s961_s13 }
 0xa04   :  { %s1462_s22 = scalar_lea.vmem %s962_s13, 256  ;;  %p1467_p3 = scmp.lt.s32.totalorder %s962_s13, %s962_s13 }
 0xa05   :  { %p1463_p2 = scmp.ne.s32.totalorder %s962_s13, %s1462_s22  ;;  %p1468_p4 = scmp.lt.s32.totalorder %s1462_s22, %s1462_s22 }
 0xa07   :  { %p1469_p5 = por %p1468_p4, %p1467_p3 }
 0xa09   :  { %p1470_p6 = pnand %p1469_p5, %p1463_p2 }
 0xa0b   :  { %1473 = shalt.err (!%p1470_p6)
}
 0xa0c   :  { %s1474_s1 = scalar_lea.hbm %s1917_s14, 256 }
 0xa0d   :  { %p1475_p7 = scmp.ne.s32.totalorder %s1917_s14, %s1474_s1  ;;  %p1478_p8 = scmp.lt.u32.totalorder %s1474_s1, %s1917_s14 }
 0xa0f   :  { %p1480_p9 = pnand %p1478_p8, %p1475_p7 }
 0xa11   :  { %1483 = shalt.err (!%p1480_p9)
}
 0xa12   :  { %s1537_s17 = smov 128   ;;  %s1538_s8 = smov 8  }
 0xa13   :  { %967 = dma.vmem_to_hbm [thread:$0]  %s962_s13, 256, %s1917_s14, [#allocation5], %s1537_s17, %s1537_s17, %s1538_s8  }
 0xa14   :  { %s1539_s30 = smov [#allocation16]  }
 0xa15   :  { %s973_s16 = sshll.u32 %s1539_s30, 4  ;;  %s974_s16 = int_to_ptr.vmem [resolvable:$true] %s973_s16 }
 0xa16   :  { %s1484_s27 = scalar_lea.vmem %s974_s16, 256  ;;  %p1489_p11 = scmp.lt.s32.totalorder %s974_s16, %s974_s16 }
 0xa17   :  { %p1485_p10 = scmp.ne.s32.totalorder %s974_s16, %s1484_s27  ;;  %p1490_p12 = scmp.lt.s32.totalorder %s1484_s27, %s1484_s27 }
 0xa19   :  { %p1491_p13 = por %p1490_p12, %p1489_p11 }
 0xa1b   :  { %p1492_p0 = pnand %p1491_p13, %p1485_p10 }
 0xa1d   :  { %1495 = shalt.err (!%p1492_p0)
}
 0xa1e   :  { %s1496_s0 = scalar_lea.hbm %s1918_s15, 256 }
 0xa1f   :  { %p1497_p1 = scmp.ne.s32.totalorder %s1918_s15, %s1496_s0  ;;  %p1500_p2 = scmp.lt.u32.totalorder %s1496_s0, %s1918_s15 }
 0xa21   :  { %p1502_p3 = pnand %p1500_p2, %p1497_p1 }
 0xa23   :  { %1505 = shalt.err (!%p1502_p3)
}
 0xa24   :  { %979 = dma.vmem_to_hbm [thread:$0]  %s974_s16, 256, %s1918_s15, [#allocation17], %s1537_s17, %s1537_s17, %s1538_s8  }
 0xa25   :  { %1514 = dma.done.wait [#allocation5], 256  }
 0xa26   :  { %1515 = vsyncadd [#allocation5], 4294967040 }
 0xa27   :  { %1516 = dma.done.wait [#allocation17], 256  }
 0xa28   :  { %1517 = vsyncadd [#allocation17], 4294967040 }
 0xa29   :  { %986 = vsyncpa [#allocation4], 1 }
 0xa2a   :  { %987 = vsyncpa [#allocation7], 1 }
 0xa2b   :  { %988 = vsyncpa [#allocation10], 1 }
 0xa2c   :  { %989 = vsyncpa [#allocation13], 1 }
 0xa2d   :  { %990 = vsyncpa [#allocation5], 1 }
 0xa2e   :  { %991 = vsyncpa [#allocation17], 1 }

</bundles_post_ra>
